<compile_context>
chip_gen: v7x
topology: tpu7x:2x2x1
jax: 0.10.0
libtpu: 0.0.40
codegen_flags: <defaults>
</compile_context>

<pallas_src>
import functools

import jax
import jax.numpy as jnp
from jax.experimental import pallas as pl
from jax.experimental.pallas import tpu as pltpu


def _round_up(x, m):
    return ((x + m - 1) // m) * m


def _cdiv(a, b):
    return (a + b - 1) // b


def _vmem_capacity_bytes():
    try:
        cap = int(pltpu.get_tpu_info().vmem_capacity_bytes)
        if cap > 0:
            return cap
    except Exception:
        pass
    return 64 << 20  # conservative: v7x per-TensorCore VMEM


# --------------------------------------------------------------------------
# Kernels
# --------------------------------------------------------------------------
def _linear_fused_kernel(x_ref, w_ref, b_ref, o_ref):
    """Single-K path: one dot + bias + cast per output tile (no scratch)."""
    acc = jnp.dot(
        x_ref[...].astype(w_ref.dtype),   # in-kernel activation cast
        w_ref[...],
        preferred_element_type=jnp.float32,
    )
    o_ref[...] = (acc + b_ref[...]).astype(o_ref.dtype)


def _linear_acc_kernel(x_ref, w_ref, b_ref, o_ref, acc_ref):
    """Rare fallback: K split across the innermost (arbitrary) grid axis."""
    k = pl.program_id(2)

    @pl.when(k == 0)
    def _():
        acc_ref[...] = jnp.zeros_like(acc_ref)

    acc_ref[...] += jnp.dot(
        x_ref[...].astype(w_ref.dtype),
        w_ref[...],
        preferred_element_type=jnp.float32,
    )

    @pl.when(k == pl.num_programs(2) - 1)
    def _():
        o_ref[...] = (acc_ref[...] + b_ref[...]).astype(o_ref.dtype)


# --------------------------------------------------------------------------
# Tile selection (trace-time, shape-static)
# --------------------------------------------------------------------------
def _select_tiles(M, K, N, x_isz, w_isz, o_isz, budget):
    def footprint(tm, tn, tk, multi):
        fp = 2 * tm * tk * x_isz          # x double buffer
        fp += 2 * tk * tn * w_isz         # weight double buffer
        fp += 2 * tn * 4                  # bias (f32) double buffer
        fp += 2 * tm * tn * o_isz         # output double buffer
        if multi:
            fp += tm * tn * 4             # f32 accumulator scratch
        return fp

    tm_cands = sorted(
        {c for c in (1024, 512, 256, 128, 64, 32, 16) if c < M} | {M},
        reverse=True,
    )
    if M >= 128:  # keep the MXU filled for real token counts
        tm_cands = [c for c in tm_cands if c >= 128]
    tn_cands = sorted(
        {c for c in (4096, 2048, 1024, 512, 256, 128) if c < N} | {N},
        reverse=True,
    )

    # ---- single-K schedules, scored by estimated HBM traffic ------------
    best = None
    for tm in tm_cands:
        for tn in tn_cands:
            if footprint(tm, tn, K, multi=False) > budget:
                continue
            gi, gj = _cdiv(M, tm), _cdiv(N, tn)
            w_traffic = K * N * w_isz * (1 if gj == 1 else gi)
            x_traffic = M * K * x_isz * gj
            traffic = w_traffic + x_traffic + M * N * o_isz
            key = (traffic, gi * gj)
            if best is None or key < best[0]:
                best = (key, (tm, tn, K, True))
    if best is not None:
        return best[1]

    # ---- K-split accumulation fallback -----------------------------------
    for tk in (4096, 2048, 1024, 512, 256, 128):
        if K % tk:
            continue
        for tm in tm_cands:
            for tn in tn_cands:
                if footprint(tm, tn, tk, multi=True) <= budget:
                    return tm, tn, tk, False
    # last resort (K will be zero-padded to a multiple of 128 by the caller)
    return tm_cands[-1], (128 if N >= 128 else N), 128, False


# --------------------------------------------------------------------------
# Wrapper
# --------------------------------------------------------------------------
@functools.partial(jax.jit, static_argnames=("out_dtype",))
def qwen2_connector(x, weight_t, bias, *, out_dtype=None):
    """nn.Linear over the last dim.

    x:        [..., K] activations (any float dtype; cast inside the kernel).
    weight_t: [K, N] weight, transposed and (optionally) pre-cast to the
              compute dtype (e.g. bf16) once at model-load time.
    bias:     [N].
    """
    *lead, K = x.shape
    Kw, N = weight_t.shape
    assert K == Kw, f"weight_t must be [K, N]; got K={K}, Kw={Kw}"
    M = 1
    for d in lead:
        M *= d
    out_dtype = x.dtype if out_dtype is None else out_dtype

    x2d = x.reshape(M, K)
    b2d = bias.astype(jnp.float32).reshape(1, N)   # tiny, once per call
    w2d = weight_t

    x_isz = x2d.dtype.itemsize
    w_isz = w2d.dtype.itemsize
    o_isz = jnp.dtype(out_dtype).itemsize

    cap = _vmem_capacity_bytes()
    budget = int(cap * 0.45)        # pipeline-footprint target
    vmem_limit = int(cap * 0.70)    # scoped-VMEM limit with headroom

    tm, tn, tk, single_k = _select_tiles(M, K, N, x_isz, w_isz, o_isz, budget)

    # Guarantee >= 2 parallel programs so both v7x TensorCores (and the
    # v5e/v6e megacore halves) get work even for small connectors.
    if _cdiv(M, tm) * _cdiv(N, tn) < 2:
        if N >= 256:
            tn = max(128, ((tn // 2) // 128) * 128)
        elif M >= 32:
            tm = max(16, _round_up(_cdiv(M, 2), 16))

    # Rare fallback: K-split tile that does not divide K -> zero-pad K only
    # (zeros contribute exactly nothing to the reduction).
    if (not single_k) and (K % tk):
        Kp = _round_up(K, tk)
        x2d = jnp.pad(x2d, ((0, 0), (0, Kp - K)))
        w2d = jnp.pad(w2d, ((0, Kp - K), (0, 0)))
        K = Kp

    cost = pl.CostEstimate(
        flops=2 * M * K * N,
        transcendentals=0,
        bytes_accessed=(M * K * x_isz + K * N * w_isz + N * 4 + M * N * o_isz),
    )
    compiler_params = pltpu.CompilerParams(
        dimension_semantics=(
            ("parallel", "parallel")
            if single_k
            else ("parallel", "parallel", "arbitrary")
        ),
        vmem_limit_bytes=vmem_limit,
    )

    if single_k:
        grid = (_cdiv(M, tm), _cdiv(N, tn))
        out2d = pl.pallas_call(
            _linear_fused_kernel,
            out_shape=jax.ShapeDtypeStruct((M, N), out_dtype),
            grid_spec=pltpu.PrefetchScalarGridSpec(
                num_scalar_prefetch=0,
                grid=grid,
                in_specs=[
                    pl.BlockSpec((tm, K), lambda i, j: (i, 0)),
                    pl.BlockSpec((K, tn), lambda i, j: (0, j)),
                    pl.BlockSpec((1, tn), lambda i, j: (0, j)),
                ],
                out_specs=pl.BlockSpec((tm, tn), lambda i, j: (i, j)),
            ),
            compiler_params=compiler_params,
            cost_estimate=cost,
        )(x2d, w2d, b2d)
    else:
        grid = (_cdiv(M, tm), _cdiv(N, tn), K // tk)
        out2d = pl.pallas_call(
            _linear_acc_kernel,
            out_shape=jax.ShapeDtypeStruct((M, N), out_dtype),
            grid_spec=pltpu.PrefetchScalarGridSpec(
                num_scalar_prefetch=0,
                grid=grid,
                in_specs=[
                    pl.BlockSpec((tm, tk), lambda i, j, k: (i, k)),
                    pl.BlockSpec((tk, tn), lambda i, j, k: (k, j)),
                    pl.BlockSpec((1, tn), lambda i, j, k: (0, j)),
                ],
                out_specs=pl.BlockSpec((tm, tn), lambda i, j, k: (i, j)),
                scratch_shapes=[pltpu.VMEM((tm, tn), jnp.float32)],
            ),
            compiler_params=compiler_params,
            cost_estimate=cost,
        )(x2d, w2d, b2d)

    return out2d.reshape(*lead, N)


if __name__ == "__main__":
    # Small shapes consistent with the module (Linear over the last dim).
    batch, seq = 2, 8
    input_dim, output_dim = 256, 256

    key = jax.random.PRNGKey(0)
    kx, kw, kb = jax.random.split(key, 3)

    x = jax.random.normal(kx, (batch, seq, input_dim), dtype=jnp.float32)
    # Deterministic params mimicking nn.Linear's uniform(-1/sqrt(K), 1/sqrt(K)).
    bound = 1.0 / (input_dim ** 0.5)
    weight = jax.random.uniform(
        kw, (output_dim, input_dim), minval=-bound, maxval=bound,
        dtype=jnp.float32,
    )  # PyTorch layout [out, in]
    bias = jax.random.uniform(
        kb, (output_dim,), minval=-bound, maxval=bound, dtype=jnp.float32
    )

    # Model-load-time preprocessing (done once, outside the jitted forward):
    # transpose to [K, N] and cast to bf16 compute dtype.
    weight_t = jnp.asarray(weight.T, dtype=jnp.bfloat16)

    out = qwen2_connector(x, weight_t, bias)
    out = jax.block_until_ready(out)
    assert out.shape == (batch, seq, output_dim)

    # Reference 1: same numerics as the kernel (bf16 operands, f32 accumulate).
    ref_bf16 = (
        jnp.dot(
            x.reshape(-1, input_dim).astype(jnp.bfloat16),
            weight_t,
            preferred_element_type=jnp.float32,
        )
        + bias
    ).reshape(batch, seq, output_dim)
    assert jnp.allclose(out.astype(jnp.float32), ref_bf16, atol=2e-3, rtol=2e-3)

    # Reference 2: full-precision nn.Linear semantics (loose tol for bf16 weight).
    ref_f32 = x @ weight.T + bias
    assert jnp.allclose(out.astype(jnp.float32), ref_f32, atol=5e-2, rtol=5e-2)

    print("KERNEL_OK")
</pallas_src>

<mosaic_0001>
module attributes {stable_mosaic.version = 11 : i64} {
  func.func @_linear_fused_kernel(%arg0: i32, %arg1: i32, %arg2: memref<16x256xf32, #tpu.memory_space<vmem>>, %arg3: memref<256x128xbf16, #tpu.memory_space<vmem>>, %arg4: memref<1x128xf32, #tpu.memory_space<vmem>>, %arg5: memref<16x128xf32, #tpu.memory_space<vmem>>) attributes {dimension_semantics = [#tpu.dimension_semantics<parallel>, #tpu.dimension_semantics<parallel>], iteration_bounds = array<i64: 1, 2>, scalar_prefetch = 0 : i64, scratch_operands = 0 : i64, tpu.core_type = #tpu.core_type<tc>, window_params = [{transform_indices = @transform_0, window_bounds = array<i64: 16, 256>}, {transform_indices = @transform_1, window_bounds = array<i64: 256, 128>}, {transform_indices = @transform_2, window_bounds = array<i64: 1, 128>}, {transform_indices = @transform_3, window_bounds = array<i64: 16, 128>}]} {
    %c0 = arith.constant 0 : index
    %c0_0 = arith.constant 0 : index
    %0 = vector.load %arg2[%c0, %c0_0] : memref<16x256xf32, #tpu.memory_space<vmem>>, vector<16x256xf32>
    %1 = arith.truncf %0 : vector<16x256xf32> to vector<16x256xbf16>
    %c0_1 = arith.constant 0 : index
    %c0_2 = arith.constant 0 : index
    %2 = vector.load %arg3[%c0_1, %c0_2] : memref<256x128xbf16, #tpu.memory_space<vmem>>, vector<256x128xbf16>
    %cst = arith.constant dense<0.000000e+00> : vector<16x128xf32>
    %3 = tpu.matmul %1, %2, %cst {dimension_numbers = #tpu.dot_dimension_numbers<[1], [0], [0], [1], [0, 0, 1, 1], [], []>} : vector<16x256xbf16>, vector<256x128xbf16>, vector<16x128xf32> -> vector<16x128xf32>
    %c0_3 = arith.constant 0 : index
    %c0_4 = arith.constant 0 : index
    %4 = vector.load %arg4[%c0_3, %c0_4] : memref<1x128xf32, #tpu.memory_space<vmem>>, vector<1x128xf32>
    %5 = vector.broadcast %4 : vector<1x128xf32> to vector<16x128xf32>
    %6 = arith.addf %3, %5 : vector<16x128xf32>
    %c0_5 = arith.constant 0 : index
    %c0_6 = arith.constant 0 : index
    %7 = vector.load %arg5[%c0_5, %c0_6] : memref<16x128xf32, #tpu.memory_space<vmem>>, vector<16x128xf32>
    tpu.vector_store %arg5[%c0_5, %c0_6], %6 {strides = array<i32>} : memref<16x128xf32, #tpu.memory_space<vmem>>, vector<16x128xf32>,
    return
  }
  func.func @transform_0(%arg0: i32, %arg1: i32) -> (i32, i32) {
    %c0_i32 = arith.constant 0 : i32
    %c0_i32_0 = arith.constant 0 : i32
    return %arg0, %c0_i32 : i32, i32
  }
  func.func @transform_1(%arg0: i32, %arg1: i32) -> (i32, i32) {
    %c0_i32 = arith.constant 0 : i32
    %c0_i32_0 = arith.constant 0 : i32
    return %c0_i32, %arg1 : i32, i32
  }
  func.func @transform_2(%arg0: i32, %arg1: i32) -> (i32, i32) {
    %c0_i32 = arith.constant 0 : i32
    %c0_i32_0 = arith.constant 0 : i32
    return %c0_i32, %arg1 : i32, i32
  }
  func.func @transform_3(%arg0: i32, %arg1: i32) -> (i32, i32) {
    %c0_i32 = arith.constant 0 : i32
    return %arg0, %arg1 : i32, i32
  }
}

</mosaic_0001>

<bundles_post_ra>
// kernel: qwen2_connector.1
= control target key start
LH: loop header
LB: loop body
LE: loop exit
PB: predicated region body
PF: predicated region fallthrough
CT: control target
= control target key end

     0   :  { %8 = vsyncpa [#allocation3], 0  ;;  %s1121_s0 = inlined_call_operand.hbm [shape: f32[16,256], index: 0, kind: input, shape index: {}]   ;;  %s1122_s1 = inlined_call_operand.hbm [shape: bf16[256,256], index: 1, kind: input, shape index: {}]   ;;  %s1123_s2 = inlined_call_operand.vmem [shape: f32[1,256], index: 2, kind: input, shape index: {}]   ;;  %s1124_s3 = inlined_call_operand.hbm [shape: f32[16,256], index: 3, kind: output, shape index: {}]  }
   0x1   :  { %9 = vsyncpa [#allocation6], 0 }
   0x2   :  { %11 = vsyncpa [#allocation6 + $0x1], 0 }
   0x3   :  { %12 = vsyncpa [#allocation4], 0 }
   0x4   :  { %14 = vsyncpa [#allocation4 + $0x1], 0  ;;  %s877_s12 = smov 0   ;;  %s879_s13 = smov 0  }
   0x5   :  { %s881_s14 = smov 0   ;;  %s883_s15 = smov 0  }
   0x6   :  { %s885_s16 = smov 0   ;;  %s887_s17 = smov 0  }
   0x7 LB: > { %s549_s18 = sadd.s32 4294967295, %s844_s17   ;;  %s550_s19 = sadd.s32 4294967294, %s844_s17   ;;  %s844_s17 = sphi %s887_s17, %s20_s17   ;;  %s840_s16 = sphi %s885_s16, %s1150_s16   ;;  %s836_s15 = sphi %s883_s15, %s1149_s15   ;;  %s832_s14 = sphi %s881_s14, %s1148_s14   ;;  %s828_s13 = sphi %s879_s13, %s1147_s13   ;;  %s824_s12 = sphi %s877_s12, %s1146_s12  }
   0x8   : > { %p72_p0 = scmp.ne.s32.totalorder %s832_s14, %s828_s13  ;;  %p73_p1 = scmp.eq.s32.totalorder %s844_s17, 0 }
   0x9   : > { %p78_p2 = scmp.ne.s32.totalorder %s828_s13, %s824_s12  ;;  %p914_p3 = scmp.eq.s32.totalorder %s549_s18, 0 }
   0xa   : > { %p918_p4 = por %p73_p1, %p72_p0  ;;  %p130_p5 = scmp.eq.s32.totalorder %s549_s18, 1 }
   0xb   : > { %s1131_s20 = scalar_select %p914_p3, 1, 0 }
   0xc   : > { %p924_p6 = por %p914_p3, %p78_p2  ;;  %p136_p7 = scmp.eq.s32.totalorder %s550_s19, 1 }
   0xd   : > { %p928_p8 = por %p130_p5, %p72_p0  ;;  %p551_p9 = scmp.ge.s32.totalorder %s844_s17, 1 }
   0xe   : > { %s1133_s22 = scalar_select %p924_p6, 1, 0 }
   0xf   : > { %s1134_s23 = scalar_select %p928_p8, 1, 0 }
  0x10   : > { %p933_p10 = por %p136_p7, %p78_p2  ;;  %p143_p11 = scmp.lt.s32.totalorder %s844_s17, 3 }
  0x11   : > { %s846_s26 = smov [#allocation2]   ;;  %p624_p1 = scmp.lt.s32.totalorder %s844_s17, 2 }
  0x12   : > { %s1135_s24 = scalar_select %p933_p10, 1, 0 }
  0x13   : > { %p938_p12 = pnand %p551_p9, %p143_p11  ;;  %s159_s27 = sshll.u32 %s846_s26, 4  ;;  %s942_s27 = int_to_ptr.vmem [resolvable:$true] %s159_s27 }
  0x14   : > { %p956_p2 = pnand %p624_p1, %p918_p4  ;;  %s29_s30 = sadd.s32 1, %s840_s16 }
  0x15   : > { %s1136_s25 = scalar_select %p938_p12, 1, 0 }
  0x16   : > { %p611_p13 = pneg %p938_p12  ;;  %s700_s6 = scalar_lea.hbm %s1121_s0, 512 }
  0x17   : > { %s1138_s29 = scalar_select %p956_p2, 1, 0 }
  0x18   : > { %p950_p5 = pnand %p611_p13, %p914_p3  ;;  %p701_p7 = scmp.ne.s32.totalorder %s1121_s0, %s700_s6 }
  0x19   : > { %p707_p4 = scmp.lt.u32.totalorder %s700_s6, %s1121_s0 }
  0x1a   : > { %p702_p9 = pneg %p950_p5 }
  0x1c   : > { %p703_p11 = pnand %p702_p9, %p701_p7 }
  0x1e   : > { %p704_p13 = pneg %p703_p11 }
  0x20   : > { %p709_p1 = pnand %p707_p4, %p704_p13 }
  0x22   : > { %712 = shalt.err (!%p709_p1)
}
  0x23   : > { %s713_s11 = scalar_lea.vmem %s942_s27, 512  ;;  %p721_p6 = scmp.lt.s32.totalorder %s942_s27, %s942_s27 }
  0x24   : > { %p714_p0 = scmp.ne.s32.totalorder %s942_s27, %s713_s11  ;;  %p722_p3 = scmp.lt.s32.totalorder %s713_s11, %s713_s11 }
  0x26   : > { %p716_p10 = pnand %p714_p0, %p702_p9  ;;  %p723_p12 = por %p722_p3, %p721_p6 }
  0x28   : > { %p717_p8 = pneg %p716_p10 }
  0x2a   : > { %p724_p2 = pnand %p723_p12, %p717_p8 }
  0x2c   : > { %727 = shalt.err (!%p724_p2)
}
  0x2d   : > { %s847_s18 = smov 256   ;;  %s848_s19 = smov 16  }
  0x2e   : > { %614 = dma.hbm_to_vmem [thread:$0]  (!%p950_p5), %s1121_s0, 512, %s942_s27, [#allocation3], %s847_s18, %s847_s18, %s848_s19  }
  0x2f   : > { %p30_p10 = scmp.ge.s32.totalorder %s29_s30, 2  ;;  %s65_s4 = sadd.s32 1, %s832_s14 }
  0x30   : > { %s173_s5 = sand.u32 1, %s832_s14   ;;  %s555_s8 = sshll.u32 %s840_s16, 6 }
  0x31   : > { %s1152_s30 = smov (%p30_p10, %s29_s30), 0  ;;  %s554_s6 = sshll.u32 %s173_s5, 7 }
  0x32   : > { %s62_s7 = ssub.s32 %s840_s16, %s1152_s30  ;;  %s992_s28 = scalar_lea.hbm %s1122_s1, %s555_s8 }
  0x33   : > { %p63_p3 = scmp.eq.s32.totalorder %s62_s7, 0  ;;  %s177_s27 = scalar_lea.vmem [#allocation5], %s554_s6 }
  0x34   : > { %s183_s11 = sshll.u32 %s177_s27, 4  ;;  %s999_s19 = scalar_lea.sflag [#allocation6], %s173_s5  ;;  %s997_s11 = int_to_ptr.vmem [resolvable:$true] %s183_s11 }
  0x35   : > { %s995_s18 = scalar_select %p63_p3, %s832_s14, %s65_s4  }
  0x36   : > { %s728_s21 = scalar_lea.hbm %s992_s28, 2048  ;;  %p1139_p8 = scmp.ne.s32.totalorder %s1138_s29, 0 }
  0x37   : > { %p729_p6 = scmp.ne.s32.totalorder %s992_s28, %s728_s21  ;;  %s733_s8 = scalar_lea.hbm %s1122_s1, 4096 }
  0x38   : > { %p730_p12 = pneg %p1139_p8  ;;  %p734_p2 = scmp.lt.u32.totalorder %s992_s28, %s1122_s1 }
  0x39   : > { %p735_p7 = scmp.lt.u32.totalorder %s733_s8, %s728_s21  ;;  %p737_p11 = scmp.lt.u32.totalorder %s728_s21, %s992_s28 }
  0x3a   : > { %p731_p0 = pnand %p730_p12, %p729_p6 }
  0x3b   : > { %p736_p9 = por %p735_p7, %p734_p2 }
  0x3c   : > { %p732_p5 = pneg %p731_p0 }
  0x3d   : > { %p738_p13 = por %p737_p11, %p736_p9 }
  0x3f   : > { %p739_p4 = pnand %p738_p13, %p732_p5 }
  0x41   : > { %742 = shalt.err (!%p739_p4)
}
  0x42   : > { %s743_s4 = scalar_lea.vmem %s997_s11, 2048  ;;  %s849_s5 = smov [#allocation5]  }
  0x43   : > { %p744_p1 = scmp.ne.s32.totalorder %s997_s11, %s743_s4  ;;  %s748_s10 = sshll.u32 %s849_s5, 4  ;;  %s749_s10 = int_to_ptr.vmem [resolvable:$false] %s748_s10 }
  0x44   : > { %s750_s27 = scalar_lea.vmem %s749_s10, 4096  ;;  %p751_p6 = scmp.lt.s32.totalorder %s997_s11, %s749_s10 }
  0x45   : > { %p746_p10 = pnand %p744_p1, %p730_p12  ;;  %p752_p0 = scmp.lt.s32.totalorder %s750_s27, %s743_s4 }
  0x47   : > { %p747_p3 = pneg %p746_p10  ;;  %p753_p2 = por %p752_p0, %p751_p6 }
  0x49   : > { %p754_p7 = pnand %p753_p2, %p747_p3 }
  0x4b   : > { %757 = shalt.err (!%p754_p7)
}
  0x4c   : > { %s850_s21 = smov 128   ;;  %s851_s26 = smov 64  }
  0x4d   : > { %s852_s7 = smov 4   ;;  %p1140_p12 = scmp.ne.s32.totalorder %s1136_s25, 0 }
  0x4e   : > { %618 = dma.hbm_to_vmem [thread:$0]  (!%p1139_p8), %s992_s28, 2048, %s997_s11, %s999_s19, %s850_s21, %s851_s26, %s852_s7  }
  0x4f   : > { %201 = sbr.rel (%p1140_p12) target bundleno = 359 (0x167), region = 32  ;;  %p1141_p5 = scmp.ne.s32.totalorder (!%p1140_p12), %s1131_s20, 0 }
  0x56   : > { %811 = dma.done.wait (%p1141_p5), [#allocation3], 512  }
  0x57   : > { %813 = vsyncadd (%p1141_p5), [#allocation3], 4294966784  ;;  %s1034_s8 = sand.u32 1, %s828_s13   ;;  %p1142_p8 = scmp.ne.s32.totalorder %s1133_s22, 0 }
  0x58   : > { %s558_s6 = sshll.u32 %s1034_s8, 7  ;;  %s208_s9 = scalar_lea.sflag [#allocation6], %s1034_s8 }
  0x59   : > { %s1038_s4 = scalar_lea.vmem [#allocation5], %s558_s6 }
  0x5a   : > { %815 = dma.done.wait (%p1142_p8), %s208_s9, 2048  }
  0x5b   : > { %817 = vsyncadd (%p1142_p8), %s208_s9, 4294965248  ;;  %v684_v0 = vld [vmem:[%s1038_s4 + $0x40] sm:$0xff]   ;;  %v686_v2 = vld [vmem:[%s1038_s4 + $0x48] sm:$0xff]   ;;  %p238_p9 = scmp.lt.s32.totalorder %s836_s15, 1  ;;  %s559_s22 = sshll.u32 %s1034_s8, 4 }
  0x5c   : > { %v685_v1 = vld [vmem:[%s1038_s4] sm:$0xff]   ;;  %581 = vmatprep.subr.bf16.mxu0 %v684_v0  ;;  %v687_v3 = vld [vmem:[%s1038_s4 + $0x8] sm:$0xff]   ;;  %v688_v4 = vld [vmem:[%s1038_s4 + $0x50] sm:$0xff]   ;;  %s236_s11 = scalar_lea.vmem [#allocation7], %s559_s22  ;;  %s578_s5 = sshll.u32 %s836_s15, 7 }
  0x5d   : > { %582 = vmatpush3.bf16.msra.mxu0 %v685_v1  ;;  %v689_v5 = vld [vmem:[%s1038_s4 + $0x10] sm:$0xff]   ;;  %v690_v6 = vld [vmem:[%s1038_s4 + $0x58] sm:$0xff]   ;;  %v692_v8 = vld [vmem:[%s1038_s4 + $0x60] sm:$0xff]   ;;  %s239_s20 = scalar_select %p238_p9, %s836_s15, 1 }
  0x5e   : > { %583 = vmatprep.subr.bf16.mxu0 %v686_v2  ;;  %v691_v7 = vld [vmem:[%s1038_s4 + $0x18] sm:$0xff]   ;;  %v693_v9 = vld [vmem:[%s1038_s4 + $0x20] sm:$0xff]   ;;  %v694_v10 = vld [vmem:[%s1038_s4 + $0x68] sm:$0xff]   ;;  %s443_s19 = sshll.u32 %s236_s11, 4  ;;  %s1072_s21 = scalar_lea.hbm %s1124_s3, %s578_s5  ;;  %s1067_s19 = int_to_ptr.vmem [resolvable:$true] %s443_s19 }
  0x5f   : > { %v244_v11 = vld [vmem:[#allocation2 + $0x8] sm:$0xff]  ;;  %v246_v12 = vld [vmem:[#allocation2 + $0x18] sm:$0xff]  ;;  %v696_v15 = vld [vmem:[%s1038_s4 + $0x70] sm:$0xff]   ;;  %s240_s28 = scalar_lea.vmem %s1123_s2, %s239_s20  ;;  %s428_s26 = scalar_lea.sflag [#allocation4], %s1034_s8 }
  0x60   : > { %v248_v13 = vpack.c.bf16 %v246_v12, %v244_v11  ;;  %v695_v14 = vld [vmem:[%s1038_s4 + $0x28] sm:$0xff]   ;;  %v697_v16 = vld [vmem:[%s1038_s4 + $0x30] sm:$0xff]   ;;  %v698_v17 = vld [vmem:[%s1038_s4 + $0x78] sm:$0xff]   ;;  %s758_s7 = scalar_lea.vmem %s1067_s19, 256  ;;  %p1143_p13 = scmp.ne.s32.totalorder %s1134_s23, 0 }
  0x61   : > { %584 = vmatpush3.bf16.msra.mxu0 %v687_v3  ;;  %v699_v18 = vld [vmem:[%s1038_s4 + $0x38] sm:$0xff]   ;;  %v243_v19 = vld [vmem:[#allocation2] sm:$0xff]  ;;  %v245_v20 = vld [vmem:[#allocation2 + $0x10] sm:$0xff]  ;;  %p759_p11 = scmp.ne.s32.totalorder %s1067_s19, %s758_s7  ;;  %s853_s15 = smov [#allocation7]  }
  0x62   : > { %585 = vmatprep.subr.bf16.mxu0 %v688_v4  ;;  %416 = vmatprep.mubr.bf16.mxu0 %v248_v13  ;;  %v247_v21 = vpack.c.bf16 %v245_v20, %v243_v19  ;;  %v560_v23 = vld [vmem:[%s240_s28] ss:$0 sm:$0xff]  ;;  %s762_s6 = sshll.u32 %s853_s15, 4  ;;  %s763_s6 = int_to_ptr.vmem [resolvable:$false] %s762_s6 }
  0x63   : > { %p760_p4 = pnand %p759_p11, %p1143_p13  ;;  %s764_s9 = scalar_lea.vmem %s763_s6, 512 }
  0x64   : > { %p765_p10 = scmp.lt.s32.totalorder %s1067_s19, %s763_s6  ;;  %p766_p3 = scmp.lt.s32.totalorder %s764_s9, %s758_s7 }
  0x65   : > { %586 = vmatpush3.bf16.msra.mxu0 %v689_v5  ;;  %p761_p1 = pneg %p760_p4 }
  0x66   : > { %587 = vmatprep.subr.bf16.mxu0 %v690_v6  ;;  %p767_p6 = por %p766_p3, %p765_p10 }
  0x68   : > { %p768_p0 = pnand %p767_p6, %p761_p1 }
  0x69   : > { %588 = vmatpush3.bf16.msra.mxu0 %v691_v7 }
  0x6a   : > { %589 = vmatprep.subr.bf16.mxu0 %v692_v8 }
  0x6d   : > { %590 = vmatpush3.bf16.msra.mxu0 %v693_v9 }
  0x6e   : > { %591 = vmatprep.subr.bf16.mxu0 %v694_v10 }
  0x71   : > { %592 = vmatpush3.bf16.msra.mxu0 %v695_v14 }
  0x72   : > { %593 = vmatprep.subr.bf16.mxu0 %v696_v15 }
  0x75   : > { %594 = vmatpush3.bf16.msra.mxu0 %v697_v16 }
  0x76   : > { %595 = vmatprep.subr.bf16.mxu0 %v698_v17 }
  0x79   : > { %596 = vmatpush3.bf16.msra.mxu0 %v699_v18 }
  0x7c   : > { %417 = vmatmul.mubr.bf16.vlgmr.msra.gmra.mrb[0].mxu0 %v247_v21 }
 0x14f   : > { %v597_v22 = vpop.f32.mrb[0].mxu0 }
 0x150   : > { %v598_v24 = vpop.f32.mrb[1].mxu0 }
 0x151   : > { %v599_v25 = vadd.f32 %v598_v24, %v597_v22  ;;  %v600_v26 = vpop.f32.mrb[2].mxu0 }
 0x152   : > { %v601_v27 = vpop.f32.mrb[3].mxu0 }
 0x153   : > { %v419_v28 = vadd.f32 %v599_v25, %v560_v23  ;;  %v602_v29 = vadd.f32 %v601_v27, %v600_v26 }
 0x155   : > { %425 = vst [vmem:[%s236_s11] sm:$0xff] %v419_v28  ;;  %v422_v30 = vadd.f32 %v602_v29, %v560_v23 }
 0x157   : > { %426 = vst [vmem:[%s236_s11 + $0x8] sm:$0xff] %v422_v30 }
 0x158   : > { %771 = shalt.err (!%p768_p0)
}
 0x159   : > { %s772_s4 = scalar_lea.hbm %s1072_s21, 256  ;;  %s776_s25 = scalar_lea.hbm %s1124_s3, 512 }
 0x15a   : > { %p773_p2 = scmp.ne.s32.totalorder %s1072_s21, %s772_s4  ;;  %p777_p5 = scmp.lt.u32.totalorder %s1072_s21, %s1124_s3 }
 0x15b   : > { %p778_p8 = scmp.lt.u32.totalorder %s776_s25, %s772_s4  ;;  %p780_p11 = scmp.lt.u32.totalorder %s772_s4, %s1072_s21 }
 0x15c   : > { %p774_p7 = pnand %p773_p2, %p1143_p13 }
 0x15d   : > { %p779_p9 = por %p778_p8, %p777_p5 }
 0x15e   : > { %p775_p12 = pneg %p774_p7 }
 0x15f   : > { %p781_p4 = por %p780_p11, %p779_p9 }
 0x161   : > { %p782_p1 = pnand %p781_p4, %p775_p12 }
 0x163   : > { %785 = shalt.err (!%p782_p1)
}
 0x164   : > { %s854_s11 = smov 128   ;;  %s855_s5 = smov 256  }
 0x165   : > { %s856_s10 = smov 8  }
 0x166   : > { %609 = dma.vmem_to_hbm [thread:$0]  (%p1143_p13), %s1067_s19, 256, %s1072_s21, %s428_s26, %s854_s11, %s855_s5, %s856_s10  }
 0x167 PF: > { %s458_s27 = sand.u32 1, %s824_s12   ;;  %p1144_p10 = scmp.ne.s32.totalorder %s1135_s24, 0 }
 0x168   : > { %p1145_p3 = scmp.ge.s32.totalorder %s844_s17, 2  ;;  %s459_s7 = scalar_lea.sflag [#allocation4], %s458_s27 }
 0x16a   : > { %p620_p6 = pnand %p1145_p3, %p1144_p10 }
 0x16c   : > { %819 = dma.done.wait (!%p620_p6), %s459_s7, 256  }
 0x16d   : > { %821 = vsyncadd (!%p620_p6), %s459_s7, 4294967040  ;;  %s20_s17 = sadd.s32 1, %s844_s17   ;;  %s1146_s12 = smov %s828_s13 }
 0x16e   : > { %p17_p0 = scmp.ge.s32.totalorder %s20_s17, 4   ;;  %s1147_s13 = smov %s832_s14 }
 0x16f   : > { %s1148_s14 = smov %s995_s18  ;;  %s1149_s15 = smov %s840_s16 }
 0x170   : > { %s1150_s16 = smov %s1152_s30  ;;  %19 = sbr.rel (!%p17_p0) target bundleno = 7 (0x7), region = 86 }
 0x177   :  { %464 = vsyncpa [#allocation3], 1 }
 0x178   :  { %466 = vsyncpa [#allocation3 + $0x1], 1 }
 0x179   :  { %467 = vsyncpa [#allocation6], 1 }
 0x17a   :  { %469 = vsyncpa [#allocation6 + $0x1], 1 }
 0x17b   :  { %470 = vsyncpa [#allocation4], 1 }
 0x17c   :  { %472 = vsyncpa [#allocation4 + $0x1], 1 }

</bundles_post_ra>
